<compile_context>
chip_gen: v7x
topology: tpu7x:2x2x1
jax: 0.10.0
libtpu: 0.0.40
codegen_flags: <defaults>
</compile_context>

<pallas_src>
import jax
import jax.numpy as jnp
from jax import lax
from jax.experimental import pallas as pl
from jax.experimental.pallas import tpu as pltpu


def _alpha_kernel(x_ref, w_ref, b_ref, alpha_ref):
    # alpha = exp(x @ W^T + b); W stays in (d_out, d_in) layout (MXU trans_b).
    y = lax.dot_general(
        x_ref[...], w_ref[...],
        dimension_numbers=(((1,), (1,)), ((), ())),
        preferred_element_type=jnp.float32,
    ) + b_ref[...]
    alpha_ref[...] = jnp.exp(y).astype(alpha_ref.dtype)


def _round_up(v, m):
    return ((v + m - 1) // m) * m


def diag_beta_forward(x, w_mean, b_mean, w_logstd, b_logstd, *, tile_b=None):
    """Returns (alpha, beta) of the Beta distribution.

    x:        (B, D_in)      float32
    w_mean:   (D_out, D_in)  PyTorch nn.Linear layout (kept as-is, no transpose)
    b_mean:   (D_out,)
    w_logstd: (D_out, D_in)  numerically unused: its input is an all-zeros tensor
    b_logstd: (D_out,)
    """
    B, d_in = x.shape
    d_out = w_mean.shape[0]
    # Mirrors the PyTorch module's implicit shape constraint (logstd Linear is
    # applied to a zeros tensor of *output* shape) — worth flagging upstream.
    assert d_in == d_out, "DiagBeta forward requires num_inputs == num_outputs"

    # ---- beta branch: zeros @ W_logstd + b_logstd == b_logstd  ------------
    # Pure broadcast of exp(bias); no kernel work or HBM writeback needed.
    beta = jnp.broadcast_to(jnp.exp(b_logstd)[None, :], (B, d_out))

    # ---- alpha branch: tiled Pallas matmul + exp ---------------------------
    # Zero-pad feature dims to lane width (128) and the batch tile to the f32
    # sublane width (8); padded weight rows/cols are zero so the valid region
    # of the result is exact.
    d_in_p = _round_up(d_in, 128)
    d_out_p = _round_up(d_out, 128)

    if tile_b is None:
        # Largest reasonable tile: whole (padded) batch up to 512 rows, then
        # 512-row tiles so double-buffered tiles stay well under the scoped
        # VMEM limit (16 MiB v5e / 32 MiB v6e,v7x) even for d ~ few thousand.
        tile_b = 512 if B > 512 else _round_up(B, 8)
    tile_b = _round_up(tile_b, 8)
    B_p = _round_up(B, tile_b)

    x_p = jnp.zeros((B_p, d_in_p), x.dtype).at[:B, :d_in].set(x)
    w_p = jnp.zeros((d_out_p, d_in_p), w_mean.dtype).at[:d_out, :d_in].set(w_mean)
    b_p = jnp.zeros((1, d_out_p), b_mean.dtype).at[0, :d_out].set(b_mean)

    grid = (B_p // tile_b,)

    alpha_p = pl.pallas_call(
        _alpha_kernel,
        out_shape=jax.ShapeDtypeStruct((B_p, d_out_p), jnp.float32),
        grid_spec=pltpu.PrefetchScalarGridSpec(
            num_scalar_prefetch=0,
            grid=grid,
            in_specs=[
                pl.BlockSpec((tile_b, d_in_p), lambda i: (i, 0)),    # x tile
                pl.BlockSpec((d_out_p, d_in_p), lambda i: (0, 0)),   # W_mean (resident)
                pl.BlockSpec((1, d_out_p), lambda i: (0, 0)),        # b_mean
            ],
            out_specs=pl.BlockSpec((tile_b, d_out_p), lambda i: (i, 0)),
        ),
        compiler_params=pltpu.CompilerParams(
            dimension_semantics=("parallel",)),
    )(x_p, w_p, b_p)

    alpha = alpha_p[:B, :d_out]
    return alpha, beta


def _reference(x, w_mean, b_mean, w_logstd, b_logstd):
    # Pure-JAX transcription of the PyTorch forward.
    alpha = jnp.exp(x @ w_mean.T + b_mean)
    zeros = jnp.zeros_like(alpha)
    beta = jnp.exp(zeros @ w_logstd.T + b_logstd)
    return alpha, beta


if __name__ == "__main__":
    low, high = 0.0, 1.0
    key = jax.random.PRNGKey(0)

    # Small shapes consistent with the module (num_inputs == num_outputs).
    for (B, D) in [(8, 32), (64, 48)]:
        key, kx, kwm, kbm, kwl, kbl = jax.random.split(key, 6)
        x = jax.random.normal(kx, (B, D), dtype=jnp.float32)
        # Emulates orthogonal init with gain=0.01; biases small nonzero so the
        # beta = exp(bias) path is exercised nontrivially.
        w_mean = 0.01 * jax.random.normal(kwm, (D, D), dtype=jnp.float32)
        b_mean = 0.01 * jax.random.normal(kbm, (D,), dtype=jnp.float32)
        w_logstd = 0.01 * jax.random.normal(kwl, (D, D), dtype=jnp.float32)
        b_logstd = 0.01 * jax.random.normal(kbl, (D,), dtype=jnp.float32)

        alpha, beta = diag_beta_forward(x, w_mean, b_mean, w_logstd, b_logstd)
        jax.block_until_ready((alpha, beta))

        ref_alpha, ref_beta = _reference(x, w_mean, b_mean, w_logstd, b_logstd)
        assert alpha.shape == (B, D) and beta.shape == (B, D)
        assert jnp.allclose(alpha, ref_alpha, atol=1e-5, rtol=1e-5)
        assert jnp.allclose(beta, ref_beta, atol=1e-5, rtol=1e-5)

        # Distribution glue (pure JAX, not the hot path): FixedBeta.mode()
        mode = low + (alpha / (alpha + beta)) * (high - low)
        jax.block_until_ready(mode)

    print("KERNEL_OK")
</pallas_src>

<mosaic_0001>
module attributes {stable_mosaic.version = 11 : i64} {
  func.func @_alpha_kernel(%arg0: i32, %arg1: memref<8x128xf32, #tpu.memory_space<vmem>>, %arg2: memref<128x128xf32, #tpu.memory_space<vmem>>, %arg3: memref<1x128xf32, #tpu.memory_space<vmem>>, %arg4: memref<8x128xf32, #tpu.memory_space<vmem>>) attributes {dimension_semantics = [#tpu.dimension_semantics<parallel>], iteration_bounds = array<i64: 1>, scalar_prefetch = 0 : i64, scratch_operands = 0 : i64, tpu.core_type = #tpu.core_type<tc>, window_params = [{transform_indices = @transform_0, window_bounds = array<i64: 8, 128>}, {pipeline_mode = #tpu.pipeline_mode<synchronous>, transform_indices = @transform_1, window_bounds = array<i64: 128, 128>}, {pipeline_mode = #tpu.pipeline_mode<synchronous>, transform_indices = @transform_2, window_bounds = array<i64: 1, 128>}, {transform_indices = @transform_3, window_bounds = array<i64: 8, 128>}]} {
    %c0 = arith.constant 0 : index
    %c0_0 = arith.constant 0 : index
    %0 = vector.load %arg1[%c0, %c0_0] : memref<8x128xf32, #tpu.memory_space<vmem>>, vector<8x128xf32>
    %c0_1 = arith.constant 0 : index
    %c0_2 = arith.constant 0 : index
    %1 = vector.load %arg2[%c0_1, %c0_2] : memref<128x128xf32, #tpu.memory_space<vmem>>, vector<128x128xf32>
    %cst = arith.constant dense<0.000000e+00> : vector<8x128xf32>
    %2 = tpu.matmul %0, %1, %cst {dimension_numbers = #tpu.dot_dimension_numbers<[1], [1], [0], [0], [0, 0, 1, 0], [], []>} : vector<8x128xf32>, vector<128x128xf32>, vector<8x128xf32> -> vector<8x128xf32>
    %c0_3 = arith.constant 0 : index
    %c0_4 = arith.constant 0 : index
    %3 = vector.load %arg3[%c0_3, %c0_4] : memref<1x128xf32, #tpu.memory_space<vmem>>, vector<1x128xf32>
    %4 = vector.broadcast %3 : vector<1x128xf32> to vector<8x128xf32>
    %5 = arith.addf %2, %4 : vector<8x128xf32>
    %6 = math.exp %5 : vector<8x128xf32>
    %c0_5 = arith.constant 0 : index
    %c0_6 = arith.constant 0 : index
    %7 = vector.load %arg4[%c0_5, %c0_6] : memref<8x128xf32, #tpu.memory_space<vmem>>, vector<8x128xf32>
    tpu.vector_store %arg4[%c0_5, %c0_6], %6 {strides = array<i32>} : memref<8x128xf32, #tpu.memory_space<vmem>>, vector<8x128xf32>,
    return
  }
  func.func @transform_0(%arg0: i32) -> (i32, i32) {
    %c0_i32 = arith.constant 0 : i32
    %c0_i32_0 = arith.constant 0 : i32
    return %arg0, %c0_i32 : i32, i32
  }
  func.func @transform_1(%arg0: i32) -> (i32, i32) {
    %c0_i32 = arith.constant 0 : i32
    %c0_i32_0 = arith.constant 0 : i32
    %c0_i32_1 = arith.constant 0 : i32
    return %c0_i32, %c0_i32_0 : i32, i32
  }
  func.func @transform_2(%arg0: i32) -> (i32, i32) {
    %c0_i32 = arith.constant 0 : i32
    %c0_i32_0 = arith.constant 0 : i32
    %c0_i32_1 = arith.constant 0 : i32
    return %c0_i32, %c0_i32_0 : i32, i32
  }
  func.func @transform_3(%arg0: i32) -> (i32, i32) {
    %c0_i32 = arith.constant 0 : i32
    %c0_i32_0 = arith.constant 0 : i32
    return %arg0, %c0_i32 : i32, i32
  }
}

</mosaic_0001>

<bundles_post_ra>
// kernel: tpu_custom_call.1
= control target key start
LH: loop header
LB: loop body
LE: loop exit
PB: predicated region body
PF: predicated region fallthrough
CT: control target
= control target key end

     0   :  { %8 = vsyncpa [#allocation3], 0  ;;  %s387_s0 = inlined_call_operand.hbm [shape: f32[8,128], index: 0, kind: input, shape index: {}]   ;;  %s388_s1 = inlined_call_operand.hbm [shape: f32[128,128], index: 1, kind: input, shape index: {}]   ;;  %s389_s2 = inlined_call_operand.vmem [shape: f32[1,128], index: 2, kind: input, shape index: {}]   ;;  %s390_s3 = inlined_call_operand.hbm [shape: f32[8,128], index: 3, kind: output, shape index: {}]  }
   0x1   :  { %9 = vsyncpa [#allocation6], 0 }
   0x2   :  { %10 = vsyncpa [#allocation4], 0  ;;  %s313_s12 = smov [#allocation2]   ;;  %s314_s14 = smov [#allocation5]  }
   0x3   :  { %s17_s13 = sshll.u32 %s313_s12, 4  ;;  %s26_s15 = sshll.u32 %s314_s14, 4  ;;  %s18_s13 = int_to_ptr.vmem [resolvable:$true] %s17_s13  ;;  %s341_s15 = int_to_ptr.vmem [resolvable:$true] %s26_s15 }
   0x4   :  { %s241_s18 = scalar_lea.hbm %s387_s0, 128 }
   0x5   :  { %p242_p0 = scmp.ne.s32.totalorder %s387_s0, %s241_s18  ;;  %p245_p1 = scmp.lt.u32.totalorder %s241_s18, %s387_s0 }
   0x7   :  { %p247_p2 = pnand %p245_p1, %p242_p0 }
   0x9   :  { %250 = shalt.err (!%p247_p2)
}
   0xa   :  { %s251_s23 = scalar_lea.vmem %s18_s13, 128  ;;  %p256_p4 = scmp.lt.s32.totalorder %s18_s13, %s18_s13 }
   0xb   :  { %p252_p3 = scmp.ne.s32.totalorder %s18_s13, %s251_s23  ;;  %p257_p5 = scmp.lt.s32.totalorder %s251_s23, %s251_s23 }
   0xd   :  { %p258_p6 = por %p257_p5, %p256_p4 }
   0xf   :  { %p259_p7 = pnand %p258_p6, %p252_p3 }
  0x11   :  { %262 = shalt.err (!%p259_p7)
}
  0x12   :  { %20 = dma.hbm_to_vmem [thread:$0]  %s387_s0, 128, %s18_s13, [#allocation3]  }
  0x13   :  { %s263_s28 = scalar_lea.hbm %s388_s1, 2048 }
  0x14   :  { %p264_p8 = scmp.ne.s32.totalorder %s388_s1, %s263_s28  ;;  %p267_p9 = scmp.lt.u32.totalorder %s263_s28, %s388_s1 }
  0x16   :  { %p269_p10 = pnand %p267_p9, %p264_p8 }
  0x18   :  { %272 = shalt.err (!%p269_p10)
}
  0x19   :  { %s273_s6 = scalar_lea.vmem %s341_s15, 2048  ;;  %p278_p12 = scmp.lt.s32.totalorder %s341_s15, %s341_s15 }
  0x1a   :  { %p274_p11 = scmp.ne.s32.totalorder %s341_s15, %s273_s6  ;;  %p279_p13 = scmp.lt.s32.totalorder %s273_s6, %s273_s6 }
  0x1c   :  { %p280_p0 = por %p279_p13, %p278_p12 }
  0x1e   :  { %p281_p1 = pnand %p280_p0, %p274_p11 }
  0x20   :  { %284 = shalt.err (!%p281_p1)
}
  0x21   :  { %s315_s0 = smov 128   ;;  %s316_s7 = smov 8  }
  0x22   :  { %32 = dma.hbm_to_vmem [thread:$0]  %s388_s1, 2048, %s341_s15, [#allocation6], %s315_s0, %s315_s0, %s316_s7  }
  0x23   :  { %307 = dma.done.wait [#allocation3], 128  }
  0x24   :  { %308 = vsyncadd [#allocation3], 4294967168 }
  0x25   :  { %309 = dma.done.wait [#allocation6], 2048  }
  0x26   :  { %310 = vsyncadd [#allocation6], 4294965248  ;;  %v317_v0 = vmov 0.0|0.0   ;;  %vm318_vm0 = vmmov 0   ;;  %v319_v1 = vmov 0.0   ;;  %v42_v2 = vld [vmem:[#allocation5] sm:$0xff] }
  0x27   :  { %207 = vmatprep.subr.bf16.mxu0 %v317_v0  ;;  %204 = vmatprep.mubr.msk.f32.mxu0 %vm318_vm0, %v319_v1  ;;  %v43_v3 = vld [vmem:[#allocation5 + $0x8] sm:$0xff]  ;;  %v44_v5 = vld [vmem:[#allocation5 + $0x10] sm:$0xff]  ;;  %v45_v6 = vld [vmem:[#allocation5 + $0x18] sm:$0xff]  ;;  %s320_s11 = smov [#allocation7]  }
  0x28   :  { %v208_v4 = vpack.c.bf16 %v43_v3, %v42_v2  ;;  %v211_v7 = vpack.c.bf16 %v45_v6, %v44_v5  ;;  %v46_v8 = vld [vmem:[#allocation5 + $0x20] sm:$0xff]  ;;  %v47_v9 = vld [vmem:[#allocation5 + $0x28] sm:$0xff]  ;;  %v48_v11 = vld [vmem:[#allocation5 + $0x30] sm:$0xff]  ;;  %s144_s12 = sshll.u32 %s320_s11, 4  ;;  %s145_s12 = int_to_ptr.vmem [resolvable:$true] %s144_s12 }
  0x29   :  { %v214_v10 = vpack.c.bf16 %v47_v9, %v46_v8  ;;  %v49_v12 = vld [vmem:[#allocation5 + $0x38] sm:$0xff]  ;;  %v50_v14 = vld [vmem:[#allocation5 + $0x40] sm:$0xff]  ;;  %v51_v15 = vld [vmem:[#allocation5 + $0x48] sm:$0xff]  ;;  %s285_s13 = scalar_lea.vmem %s145_s12, 128  ;;  %p290_p3 = scmp.lt.s32.totalorder %s145_s12, %s145_s12 }
  0x2a   :  { %209 = vmatpush3.bf16.xpose.msra.mxu0 %v208_v4  ;;  %v217_v13 = vpack.c.bf16 %v49_v12, %v48_v11  ;;  %v220_v16 = vpack.c.bf16 %v51_v15, %v50_v14  ;;  %v52_v17 = vld [vmem:[#allocation5 + $0x50] sm:$0xff]  ;;  %v53_v18 = vld [vmem:[#allocation5 + $0x58] sm:$0xff]  ;;  %v54_v20 = vld [vmem:[#allocation5 + $0x60] sm:$0xff]  ;;  %p286_p2 = scmp.ne.s32.totalorder %s145_s12, %s285_s13  ;;  %p291_p4 = scmp.lt.s32.totalorder %s285_s13, %s285_s13 }
  0x2b   :  { %210 = vmatprep.subr.bf16.mxu0 %v317_v0  ;;  %v223_v19 = vpack.c.bf16 %v53_v18, %v52_v17  ;;  %v55_v21 = vld [vmem:[#allocation5 + $0x68] sm:$0xff]  ;;  %v56_v23 = vld [vmem:[#allocation5 + $0x70] sm:$0xff]  ;;  %v57_v24 = vld [vmem:[#allocation5 + $0x78] sm:$0xff] }
  0x2c   :  { %v226_v22 = vpack.c.bf16 %v55_v21, %v54_v20  ;;  %v229_v25 = vpack.c.bf16 %v57_v24, %v56_v23  ;;  %v41_v26 = vld [vmem:[#allocation2] sm:$0xff]  ;;  %p292_p5 = por %p291_p4, %p290_p3 }
  0x2d   :  { %v154_v27 = vld [vmem:[%s389_s2] ss:$0 sm:$0xff] }
  0x2e   :  { %p293_p6 = pnand %p292_p5, %p286_p2 }
  0x32   :  { %212 = vmatpush3.bf16.xpose.msra.mxu0 %v211_v7 }
  0x33   :  { %213 = vmatprep.subr.bf16.mxu0 %v317_v0 }
  0x3a   :  { %215 = vmatpush3.bf16.xpose.msra.mxu0 %v214_v10 }
  0x3b   :  { %216 = vmatprep.subr.bf16.mxu0 %v317_v0 }
  0x42   :  { %218 = vmatpush3.bf16.xpose.msra.mxu0 %v217_v13 }
  0x43   :  { %219 = vmatprep.subr.bf16.mxu0 %v317_v0 }
  0x4a   :  { %221 = vmatpush3.bf16.xpose.msra.mxu0 %v220_v16 }
  0x4b   :  { %222 = vmatprep.subr.bf16.mxu0 %v317_v0 }
  0x52   :  { %224 = vmatpush3.bf16.xpose.msra.mxu0 %v223_v19 }
  0x53   :  { %225 = vmatprep.subr.bf16.mxu0 %v317_v0 }
  0x5a   :  { %227 = vmatpush3.bf16.xpose.msra.mxu0 %v226_v22 }
  0x5b   :  { %228 = vmatprep.subr.bf16.mxu0 %v317_v0 }
  0x62   :  { %230 = vmatpush3.bf16.xpose.msra.mxu0 %v229_v25 }
  0x69   :  { %205 = vmatmul.mubr.f32.vlgmr.msra.gmra.mrb[0].mxu0 %v41_v26 }
 0x13c   :  { %v131_v28 = vpop.f32.mrb[0].mxu0 }
 0x13d   :  { %v132_v29 = vadd.f32 %v154_v27, %v131_v28  ;;  %v206_v30 = vpop.f32.mrb[1].mxu0 }
 0x13f   :  { %v135_v31 = vmul.f32 1.442695, %v132_v29 }
 0x141   :  { %239 = vpow2.f32 %v135_v31 }
 0x14b   :  { %v240_v32 = vpop.eup %239 }
 0x14c   :  { %137 = vst [vmem:[#allocation7] sm:$0xff] %v240_v32 }
 0x14d   :  { %296 = shalt.err (!%p293_p6)
}
 0x14e   :  { %s297_s2 = scalar_lea.hbm %s390_s3, 128 }
 0x14f   :  { %p298_p7 = scmp.ne.s32.totalorder %s390_s3, %s297_s2  ;;  %p301_p8 = scmp.lt.u32.totalorder %s297_s2, %s390_s3 }
 0x151   :  { %p303_p9 = pnand %p301_p8, %p298_p7 }
 0x153   :  { %306 = shalt.err (!%p303_p9)
}
 0x154   :  { %147 = dma.vmem_to_hbm [thread:$0]  %s145_s12, 128, %s390_s3, [#allocation4]  }
 0x155   :  { %311 = dma.done.wait [#allocation4], 128  }
 0x156   :  { %312 = vsyncadd [#allocation4], 4294967168 }
 0x157   :  { %151 = vsyncpa [#allocation3], 1 }
 0x158   :  { %152 = vsyncpa [#allocation6], 1 }
 0x159   :  { %153 = vsyncpa [#allocation4], 1 }

</bundles_post_ra>
